<compile_context>
chip_gen: v7x
topology: tpu7x:2x2x1
jax: 0.10.0
libtpu: 0.0.40
codegen_flags: <defaults>
</compile_context>

<pallas_src>
import functools

import jax
import jax.numpy as jnp
from jax import lax
from jax.experimental import pallas as pl
from jax.experimental.pallas import tpu as pltpu

BN_EPS = 1e-5


def _conv_taps(act_f32, w_ref, *, pad, mxu_dtype):
    """'Same' conv1d as K weight-stationary MXU matmuls (tap-accumulate).

    act_f32 : (C, Npad) f32 activations; per-batch zero halos already present
              along the lane axis (and trailing lane padding is zero).
    w_ref   : (K, Cout, Cin) weights in the MXU dtype.
    Returns (Cout, Npad) f32.  Values at padding lanes are garbage and must be
    masked by the caller before feeding the next conv.
    """
    K = w_ref.shape[0]
    npad = act_f32.shape[-1]
    acc = None
    for k in range(K):
        shift = (pad - k) % npad
        # Lane rotation on the XLU; wrapped lanes only land on padding
        # positions, which are masked downstream.
        tap = act_f32 if shift == 0 else pltpu.roll(act_f32, shift=shift, axis=1)
        y = jnp.dot(w_ref[k], tap.astype(mxu_dtype),
                    preferred_element_type=jnp.float32)
        acc = y if acc is None else acc + y
    return acc


def _bn_masked(y, mask, gamma, beta, *, inv_n):
    """BatchNorm1d, training-mode batch stats (biased, centered var), eps=1e-5.

    y: (C, Npad) f32; mask: (1, Npad) f32 (1.0 on valid lanes); gamma/beta: (C,1).
    """
    mean = jnp.sum(y * mask, axis=1, keepdims=True) * inv_n        # (C, 1)
    d = (y - mean) * mask
    var = jnp.sum(d * d, axis=1, keepdims=True) * inv_n            # (C, 1)
    scale = gamma * lax.rsqrt(var + BN_EPS)
    return (y - mean) * scale + beta


def _basic_block_kernel(x_ref, mask_ref, w1_ref, g1_ref, b1_ref,
                        w2_ref, g2_ref, b2_ref, out_ref, *,
                        pad, n_valid, mxu_dtype):
    x = x_ref[...].astype(jnp.float32)       # (C, Npad): conv1 input + residual
    mask = mask_ref[...]                     # (1, Npad)
    inv_n = 1.0 / n_valid

    # conv1 -> bn1 -> relu  (re-zero halo lanes so conv2 taps see zeros)
    h = _conv_taps(x, w1_ref, pad=pad, mxu_dtype=mxu_dtype)
    h = _bn_masked(h, mask, g1_ref[...], b1_ref[...], inv_n=inv_n)
    h = jnp.maximum(h, 0.0) * mask

    # conv2 -> bn2
    h = _conv_taps(h, w2_ref, pad=pad, mxu_dtype=mxu_dtype)
    h = _bn_masked(h, mask, g2_ref[...], b2_ref[...], inv_n=inv_n)

    # identity residual (stride=1, downsample=None) + relu
    out_ref[...] = jnp.maximum(h + x, 0.0).astype(out_ref.dtype)


def _vmem_limit_bytes(required_bytes):
    """Generation-aware scoped-VMEM limit: footprint with headroom, capped at
    75% of physical VMEM (64 MiB on v7x, 128 MiB on v5e/v6e)."""
    cap = 128 * 1024 * 1024
    try:
        cap = int(getattr(pltpu.get_tpu_info(), "vmem_capacity_bytes", cap) or cap)
    except Exception:
        pass
    return int(min(max(2 * required_bytes, 16 * 1024 * 1024), (cap * 3) // 4))


def basic_block_pallas(x, w1, g1, b1, w2, g2, b2, *, mxu_dtype=jnp.bfloat16):
    """x: (B, C, L) NCL (PyTorch layout); conv weights w*: (Cout, Cin, K);
    BN affine g*/b*: (C,).  Fused BasicBlock forward (training-mode BN)."""
    B, C, L = x.shape
    Cout, Cin, K = w1.shape
    assert Cin == C and Cout == C, "identity residual requires inplanes == planes"
    pad = (K - 1) // 2
    Lp = L + 2 * pad                                   # per-batch segment + halos
    N = B * Lp
    Npad = max(128, ((N + 127) // 128) * 128)          # lane-dense last axis

    # One-time layout plumbing in the wrapper (tiny XLA ops):
    # (B, C, L) -> lane-dense (C, B*Lp) with zero conv halos, padded to Npad.
    xp = jnp.pad(x.astype(jnp.float32), ((0, 0), (0, 0), (pad, pad)))   # (B,C,Lp)
    xp = jnp.transpose(xp, (1, 0, 2)).reshape(C, N)
    xp = jnp.pad(xp, ((0, 0), (0, Npad - N)))

    mask = jnp.pad(jnp.ones((B, 1, L), jnp.float32), ((0, 0), (0, 0), (pad, pad)))
    mask = jnp.transpose(mask, (1, 0, 2)).reshape(1, N)
    mask = jnp.pad(mask, ((0, 0), (0, Npad - N)))

    # (Cout, Cin, K) -> (K, Cout, Cin) in the MXU dtype (weight-stationary taps).
    w1_t = jnp.transpose(w1, (2, 0, 1)).astype(mxu_dtype)
    w2_t = jnp.transpose(w2, (2, 0, 1)).astype(mxu_dtype)

    act_bytes = C * Npad * 4
    io_bytes = 2 * act_bytes + Npad * 4 + 2 * K * C * C * 2 + 4 * C * 4
    vmem_limit = _vmem_limit_bytes(io_bytes + 5 * act_bytes)

    kernel = functools.partial(_basic_block_kernel, pad=pad, n_valid=B * L,
                               mxu_dtype=mxu_dtype)
    vmem = pl.BlockSpec(memory_space=pltpu.MemorySpace.VMEM)

    out_padded = pl.pallas_call(
        kernel,
        out_shape=jax.ShapeDtypeStruct((C, Npad), x.dtype),
        in_specs=[vmem] * 8,
        out_specs=vmem,
        compiler_params=pltpu.CompilerParams(vmem_limit_bytes=vmem_limit),
    )(xp, mask, w1_t,
      g1.reshape(C, 1).astype(jnp.float32), b1.reshape(C, 1).astype(jnp.float32),
      w2_t,
      g2.reshape(C, 1).astype(jnp.float32), b2.reshape(C, 1).astype(jnp.float32))

    # (C, Npad) -> (B, C, L): drop trailing lane padding and conv halos.
    out = out_padded[:, :N].reshape(C, B, Lp)[:, :, pad:pad + L]
    return jnp.transpose(out, (1, 0, 2))


# ---- pure-JAX reference (mirrors PyTorch forward, training-mode BN) ----
def basic_block_ref(x, w1, g1, b1, w2, g2, b2):
    pad = (w1.shape[-1] - 1) // 2

    def conv(y, w):
        return lax.conv_general_dilated(
            y, w, window_strides=(1,), padding=[(pad, pad)],
            dimension_numbers=("NCH", "OIH", "NCH"),
            precision=lax.Precision.HIGHEST)

    def bn(y, g, b):
        mean = y.mean(axis=(0, 2), keepdims=True)
        var = ((y - mean) ** 2).mean(axis=(0, 2), keepdims=True)
        return (y - mean) * lax.rsqrt(var + BN_EPS) * g[None, :, None] + b[None, :, None]

    out = jnp.maximum(bn(conv(x, w1), g1, b1), 0.0)
    out = bn(conv(out, w2), g2, b2)
    return jnp.maximum(out + x, 0.0)


if __name__ == "__main__":
    B, C, L, K = 2, 8, 16, 3      # inplanes = planes = 8, kernel_size = 3, stride = 1

    key = jax.random.PRNGKey(0)
    k = jax.random.split(key, 7)
    x = jax.random.normal(k[0], (B, C, L), jnp.float32)
    w1 = jax.random.normal(k[1], (C, C, K), jnp.float32) * 0.2
    w2 = jax.random.normal(k[2], (C, C, K), jnp.float32) * 0.2
    g1 = 1.0 + 0.1 * jax.random.normal(k[3], (C,), jnp.float32)
    b1 = 0.1 * jax.random.normal(k[4], (C,), jnp.float32)
    g2 = 1.0 + 0.1 * jax.random.normal(k[5], (C,), jnp.float32)
    b2 = 0.1 * jax.random.normal(k[6], (C,), jnp.float32)

    out = basic_block_pallas(x, w1, g1, b1, w2, g2, b2)
    out = jax.block_until_ready(out)

    ref = basic_block_ref(x, w1, g1, b1, w2, g2, b2)
    assert out.shape == (B, C, L)
    # MXU operands are intentionally bf16 (MXU-native dtype) with f32
    # accumulation; tolerance is sized for bf16 product rounding through two
    # convs.  Pass mxu_dtype=jnp.float32 to basic_block_pallas for f32 parity.
    err = float(jnp.max(jnp.abs(out - ref)))
    assert jnp.allclose(out, ref, atol=3e-2, rtol=2e-2), err

    print("KERNEL_OK")
</pallas_src>

<mosaic_0001>
module attributes {stable_mosaic.version = 11 : i64} {
  func.func @_basic_block_kernel(%arg0: memref<8x128xf32, #tpu.memory_space<vmem>>, %arg1: memref<1x128xf32, #tpu.memory_space<vmem>>, %arg2: memref<3x8x8xbf16, #tpu.memory_space<vmem>>, %arg3: memref<8x1xf32, #tpu.memory_space<vmem>>, %arg4: memref<8x1xf32, #tpu.memory_space<vmem>>, %arg5: memref<3x8x8xbf16, #tpu.memory_space<vmem>>, %arg6: memref<8x1xf32, #tpu.memory_space<vmem>>, %arg7: memref<8x1xf32, #tpu.memory_space<vmem>>, %arg8: memref<8x128xf32, #tpu.memory_space<vmem>>) attributes {dimension_semantics = [], scalar_prefetch = 0 : i64, scratch_operands = 0 : i64, tpu.core_type = #tpu.core_type<tc>} {
    %c0 = arith.constant 0 : index
    %c0_0 = arith.constant 0 : index
    %0 = vector.load %arg0[%c0, %c0_0] : memref<8x128xf32, #tpu.memory_space<vmem>>, vector<8x128xf32>
    %c0_1 = arith.constant 0 : index
    %c0_2 = arith.constant 0 : index
    %1 = vector.load %arg1[%c0_1, %c0_2] : memref<1x128xf32, #tpu.memory_space<vmem>>, vector<1x128xf32>
    %c1_i32 = arith.constant 1 : i32
    %2 = tpu.dynamic_rotate %0 by %c1_i32 dim 1 : vector<8x128xf32>, i32 -> vector<8x128xf32>
    %c0_3 = arith.constant 0 : index
    %c0_4 = arith.constant 0 : index
    %c0_5 = arith.constant 0 : index
    %3 = vector.load %arg2[%c0_3, %c0_4, %c0_5] : memref<3x8x8xbf16, #tpu.memory_space<vmem>>, vector<1x8x8xbf16>
    %4 = vector.shape_cast %3 : vector<1x8x8xbf16> to vector<8x8xbf16>
    %5 = arith.truncf %2 : vector<8x128xf32> to vector<8x128xbf16>
    %cst = arith.constant dense<0.000000e+00> : vector<8x128xf32>
    %6 = tpu.matmul %4, %5, %cst {dimension_numbers = #tpu.dot_dimension_numbers<[1], [0], [0], [1], [0, 0, 1, 1], [], []>} : vector<8x8xbf16>, vector<8x128xbf16>, vector<8x128xf32> -> vector<8x128xf32>
    %c1 = arith.constant 1 : index
    %c0_6 = arith.constant 0 : index
    %c0_7 = arith.constant 0 : index
    %7 = vector.load %arg2[%c1, %c0_6, %c0_7] : memref<3x8x8xbf16, #tpu.memory_space<vmem>>, vector<1x8x8xbf16>
    %8 = vector.shape_cast %7 : vector<1x8x8xbf16> to vector<8x8xbf16>
    %9 = arith.truncf %0 : vector<8x128xf32> to vector<8x128xbf16>
    %cst_8 = arith.constant dense<0.000000e+00> : vector<8x128xf32>
    %10 = tpu.matmul %8, %9, %cst_8 {dimension_numbers = #tpu.dot_dimension_numbers<[1], [0], [0], [1], [0, 0, 1, 1], [], []>} : vector<8x8xbf16>, vector<8x128xbf16>, vector<8x128xf32> -> vector<8x128xf32>
    %11 = arith.addf %6, %10 : vector<8x128xf32>
    %c127_i32 = arith.constant 127 : i32
    %12 = tpu.dynamic_rotate %0 by %c127_i32 dim 1 : vector<8x128xf32>, i32 -> vector<8x128xf32>
    %c2 = arith.constant 2 : index
    %c0_9 = arith.constant 0 : index
    %c0_10 = arith.constant 0 : index
    %13 = vector.load %arg2[%c2, %c0_9, %c0_10] : memref<3x8x8xbf16, #tpu.memory_space<vmem>>, vector<1x8x8xbf16>
    %14 = vector.shape_cast %13 : vector<1x8x8xbf16> to vector<8x8xbf16>
    %15 = arith.truncf %12 : vector<8x128xf32> to vector<8x128xbf16>
    %cst_11 = arith.constant dense<0.000000e+00> : vector<8x128xf32>
    %16 = tpu.matmul %14, %15, %cst_11 {dimension_numbers = #tpu.dot_dimension_numbers<[1], [0], [0], [1], [0, 0, 1, 1], [], []>} : vector<8x8xbf16>, vector<8x128xbf16>, vector<8x128xf32> -> vector<8x128xf32>
    %17 = arith.addf %11, %16 : vector<8x128xf32>
    %c0_12 = arith.constant 0 : index
    %c0_13 = arith.constant 0 : index
    %18 = vector.load %arg3[%c0_12, %c0_13] : memref<8x1xf32, #tpu.memory_space<vmem>>, vector<8x1xf32>
    %c0_14 = arith.constant 0 : index
    %c0_15 = arith.constant 0 : index
    %19 = vector.load %arg4[%c0_14, %c0_15] : memref<8x1xf32, #tpu.memory_space<vmem>>, vector<8x1xf32>
    %20 = vector.broadcast %1 : vector<1x128xf32> to vector<8x128xf32>
    %21 = arith.mulf %17, %20 : vector<8x128xf32>
    %cst_16 = arith.constant dense<0.000000e+00> : vector<8xf32>
    %22 = vector.multi_reduction <add>, %21, %cst_16 [1] : vector<8x128xf32> to vector<8xf32>
    %23 = vector.shape_cast %22 : vector<8xf32> to vector<8x1xf32>
    %cst_17 = arith.constant 3.125000e-02 : f32
    %24 = vector.broadcast %cst_17 : f32 to vector<8x1xf32>
    %25 = arith.mulf %23, %24 : vector<8x1xf32>
    %26 = vector.broadcast %25 : vector<8x1xf32> to vector<8x128xf32>
    %27 = arith.subf %17, %26 : vector<8x128xf32>
    %28 = vector.broadcast %1 : vector<1x128xf32> to vector<8x128xf32>
    %29 = arith.mulf %27, %28 : vector<8x128xf32>
    %30 = arith.mulf %29, %29 : vector<8x128xf32>
    %cst_18 = arith.constant dense<0.000000e+00> : vector<8xf32>
    %31 = vector.multi_reduction <add>, %30, %cst_18 [1] : vector<8x128xf32> to vector<8xf32>
    %32 = vector.shape_cast %31 : vector<8xf32> to vector<8x1xf32>
    %cst_19 = arith.constant 3.125000e-02 : f32
    %33 = vector.broadcast %cst_19 : f32 to vector<8x1xf32>
    %34 = arith.mulf %32, %33 : vector<8x1xf32>
    %cst_20 = arith.constant 9.99999974E-6 : f32
    %35 = vector.broadcast %cst_20 : f32 to vector<8x1xf32>
    %36 = arith.addf %34, %35 : vector<8x1xf32>
    %37 = math.rsqrt %36 : vector<8x1xf32>
    %38 = arith.mulf %18, %37 : vector<8x1xf32>
    %39 = vector.broadcast %25 : vector<8x1xf32> to vector<8x128xf32>
    %40 = arith.subf %17, %39 : vector<8x128xf32>
    %41 = vector.broadcast %38 : vector<8x1xf32> to vector<8x128xf32>
    %42 = arith.mulf %40, %41 : vector<8x128xf32>
    %43 = vector.broadcast %19 : vector<8x1xf32> to vector<8x128xf32>
    %44 = arith.addf %42, %43 : vector<8x128xf32>
    %cst_21 = arith.constant 0.000000e+00 : f32
    %45 = vector.broadcast %cst_21 : f32 to vector<8x128xf32>
    %46 = arith.maximumf %44, %45 : vector<8x128xf32>
    %47 = vector.broadcast %1 : vector<1x128xf32> to vector<8x128xf32>
    %48 = arith.mulf %46, %47 : vector<8x128xf32>
    %c1_i32_22 = arith.constant 1 : i32
    %49 = tpu.dynamic_rotate %48 by %c1_i32_22 dim 1 : vector<8x128xf32>, i32 -> vector<8x128xf32>
    %c0_23 = arith.constant 0 : index
    %c0_24 = arith.constant 0 : index
    %c0_25 = arith.constant 0 : index
    %50 = vector.load %arg5[%c0_23, %c0_24, %c0_25] : memref<3x8x8xbf16, #tpu.memory_space<vmem>>, vector<1x8x8xbf16>
    %51 = vector.shape_cast %50 : vector<1x8x8xbf16> to vector<8x8xbf16>
    %52 = arith.truncf %49 : vector<8x128xf32> to vector<8x128xbf16>
    %cst_26 = arith.constant dense<0.000000e+00> : vector<8x128xf32>
    %53 = tpu.matmul %51, %52, %cst_26 {dimension_numbers = #tpu.dot_dimension_numbers<[1], [0], [0], [1], [0, 0, 1, 1], [], []>} : vector<8x8xbf16>, vector<8x128xbf16>, vector<8x128xf32> -> vector<8x128xf32>
    %c1_27 = arith.constant 1 : index
    %c0_28 = arith.constant 0 : index
    %c0_29 = arith.constant 0 : index
    %54 = vector.load %arg5[%c1_27, %c0_28, %c0_29] : memref<3x8x8xbf16, #tpu.memory_space<vmem>>, vector<1x8x8xbf16>
    %55 = vector.shape_cast %54 : vector<1x8x8xbf16> to vector<8x8xbf16>
    %56 = arith.truncf %48 : vector<8x128xf32> to vector<8x128xbf16>
    %cst_30 = arith.constant dense<0.000000e+00> : vector<8x128xf32>
    %57 = tpu.matmul %55, %56, %cst_30 {dimension_numbers = #tpu.dot_dimension_numbers<[1], [0], [0], [1], [0, 0, 1, 1], [], []>} : vector<8x8xbf16>, vector<8x128xbf16>, vector<8x128xf32> -> vector<8x128xf32>
    %58 = arith.addf %53, %57 : vector<8x128xf32>
    %c127_i32_31 = arith.constant 127 : i32
    %59 = tpu.dynamic_rotate %48 by %c127_i32_31 dim 1 : vector<8x128xf32>, i32 -> vector<8x128xf32>
    %c2_32 = arith.constant 2 : index
    %c0_33 = arith.constant 0 : index
    %c0_34 = arith.constant 0 : index
    %60 = vector.load %arg5[%c2_32, %c0_33, %c0_34] : memref<3x8x8xbf16, #tpu.memory_space<vmem>>, vector<1x8x8xbf16>
    %61 = vector.shape_cast %60 : vector<1x8x8xbf16> to vector<8x8xbf16>
    %62 = arith.truncf %59 : vector<8x128xf32> to vector<8x128xbf16>
    %cst_35 = arith.constant dense<0.000000e+00> : vector<8x128xf32>
    %63 = tpu.matmul %61, %62, %cst_35 {dimension_numbers = #tpu.dot_dimension_numbers<[1], [0], [0], [1], [0, 0, 1, 1], [], []>} : vector<8x8xbf16>, vector<8x128xbf16>, vector<8x128xf32> -> vector<8x128xf32>
    %64 = arith.addf %58, %63 : vector<8x128xf32>
    %c0_36 = arith.constant 0 : index
    %c0_37 = arith.constant 0 : index
    %65 = vector.load %arg6[%c0_36, %c0_37] : memref<8x1xf32, #tpu.memory_space<vmem>>, vector<8x1xf32>
    %c0_38 = arith.constant 0 : index
    %c0_39 = arith.constant 0 : index
    %66 = vector.load %arg7[%c0_38, %c0_39] : memref<8x1xf32, #tpu.memory_space<vmem>>, vector<8x1xf32>
    %67 = vector.broadcast %1 : vector<1x128xf32> to vector<8x128xf32>
    %68 = arith.mulf %64, %67 : vector<8x128xf32>
    %cst_40 = arith.constant dense<0.000000e+00> : vector<8xf32>
    %69 = vector.multi_reduction <add>, %68, %cst_40 [1] : vector<8x128xf32> to vector<8xf32>
    %70 = vector.shape_cast %69 : vector<8xf32> to vector<8x1xf32>
    %cst_41 = arith.constant 3.125000e-02 : f32
    %71 = vector.broadcast %cst_41 : f32 to vector<8x1xf32>
    %72 = arith.mulf %70, %71 : vector<8x1xf32>
    %73 = vector.broadcast %72 : vector<8x1xf32> to vector<8x128xf32>
    %74 = arith.subf %64, %73 : vector<8x128xf32>
    %75 = vector.broadcast %1 : vector<1x128xf32> to vector<8x128xf32>
    %76 = arith.mulf %74, %75 : vector<8x128xf32>
    %77 = arith.mulf %76, %76 : vector<8x128xf32>
    %cst_42 = arith.constant dense<0.000000e+00> : vector<8xf32>
    %78 = vector.multi_reduction <add>, %77, %cst_42 [1] : vector<8x128xf32> to vector<8xf32>
    %79 = vector.shape_cast %78 : vector<8xf32> to vector<8x1xf32>
    %cst_43 = arith.constant 3.125000e-02 : f32
    %80 = vector.broadcast %cst_43 : f32 to vector<8x1xf32>
    %81 = arith.mulf %79, %80 : vector<8x1xf32>
    %cst_44 = arith.constant 9.99999974E-6 : f32
    %82 = vector.broadcast %cst_44 : f32 to vector<8x1xf32>
    %83 = arith.addf %81, %82 : vector<8x1xf32>
    %84 = math.rsqrt %83 : vector<8x1xf32>
    %85 = arith.mulf %65, %84 : vector<8x1xf32>
    %86 = vector.broadcast %72 : vector<8x1xf32> to vector<8x128xf32>
    %87 = arith.subf %64, %86 : vector<8x128xf32>
    %88 = vector.broadcast %85 : vector<8x1xf32> to vector<8x128xf32>
    %89 = arith.mulf %87, %88 : vector<8x128xf32>
    %90 = vector.broadcast %66 : vector<8x1xf32> to vector<8x128xf32>
    %91 = arith.addf %89, %90 : vector<8x128xf32>
    %92 = arith.addf %91, %0 : vector<8x128xf32>
    %cst_45 = arith.constant 0.000000e+00 : f32
    %93 = vector.broadcast %cst_45 : f32 to vector<8x128xf32>
    %94 = arith.maximumf %92, %93 : vector<8x128xf32>
    %c0_46 = arith.constant 0 : index
    %c0_47 = arith.constant 0 : index
    %95 = vector.load %arg8[%c0_46, %c0_47] : memref<8x128xf32, #tpu.memory_space<vmem>>, vector<8x128xf32>
    tpu.vector_store %arg8[%c0_46, %c0_47], %94 {strides = array<i32>} : memref<8x128xf32, #tpu.memory_space<vmem>>, vector<8x128xf32>,
    return
  }
}

</mosaic_0001>

<bundles_post_ra>
// kernel: tpu_custom_call.1
= control target key start
LH: loop header
LB: loop body
LE: loop exit
PB: predicated region body
PF: predicated region fallthrough
CT: control target
= control target key end

     0   :  { %vm44_vm0 = vcmask 1043456   ;;  %s527_s29 = smov 1   ;;  %v528_v1 = vmov 0.0   ;;  %vm529_vm1 = vmmov 0   ;;  %s674_s0 = inlined_call_operand.vmem [shape: f32[8,128], index: 0, kind: input, shape index: {}]   ;;  %s675_s1 = inlined_call_operand.vmem [shape: f32[1,128], index: 1, kind: input, shape index: {}]   ;;  %s676_s2 = inlined_call_operand.vmem [shape: bf16[3,8,8], index: 2, kind: input, shape index: {}]   ;;  %s677_s3 = inlined_call_operand.vmem [shape: f32[8,1], index: 3, kind: input, shape index: {}]   ;;  %s678_s4 = inlined_call_operand.vmem [shape: f32[8,1], index: 4, kind: input, shape index: {}]   ;;  %s679_s5 = inlined_call_operand.vmem [shape: bf16[3,8,8], index: 5, kind: input, shape index: {}]   ;;  %s680_s6 = inlined_call_operand.vmem [shape: f32[8,1], index: 6, kind: input, shape index: {}]   ;;  %s681_s7 = inlined_call_operand.vmem [shape: f32[8,1], index: 7, kind: input, shape index: {}]   ;;  %s682_s8 = inlined_call_operand.hbm [shape: f32[8,128], index: 8, kind: output, shape index: {}]  }
   0x1   :  { %v581_v0 = vld [vmem:[%s674_s0] sm:$0xff]  ;;  %439 = vmatprep.subr.bf16.mxu0 %v528_v1  ;;  %441 = vmatprep.mubr.msk.bf16.mxu0 %vm529_vm1, %v528_v1 }
   0x2   :  { %33 = vrot.lane.b32.xlu0 %v581_v0, %s527_s29  ;;  %v39_v2 = vpack.c.bf16 %v581_v0, %v581_v0  ;;  %457 = vmatprep.subr.bf16.mxu1 %v528_v1 }
   0x3   :  { %13 = vsyncpa [#allocation3], 0  ;;  %459 = vmatprep.mubr.msk.bf16.mxu1 %vm529_vm1, %v528_v1  ;;  %v416_v4 = vld [vmem:[%s676_s2 + $0x4] sm:$0xf]  ;;  %vm40_vm2 = vcmask 64512   ;;  %s530_s9 = smov 127  }
   0x4   :  { %v46_v3 = vsel %vm44_vm0, %v39_v2, 0  ;;  %v35_v8 = vld [vmem:[%s676_s2] sm:$0xf]  ;;  %v419_v12 = vld [vmem:[%s676_s2 + $0x8] sm:$0xf]  ;;  %v531_v24 = vmov 0  }
   0x5   :  { %440 = vmatpush3.bf16.msra.mxu0 %v46_v3  ;;  %v619_v13 = vld [vmem:[%s675_s1] ss:$0 sm:$0xff]  ;;  %497 = vset.pattern.permute.xlu0 %v531_v24  ;;  %v422_v40 = vld [vmem:[%s679_s5 + $0x4] sm:$0xf]  ;;  %v425_v48 = vld [vmem:[%s679_s5 + $0x8] sm:$0xf] }
   0x6   :  { %134 = vrot.lane.b32.xlu0 %v581_v0, %s530_s9  ;;  %445 = vmatprep.subr.bf16.mxu0 %v528_v1  ;;  %v187_v25 = vld [vmem:[%s678_s4] sm:$0xff]  ;;  %s532_s25 = smov [#allocation2]  }
   0x7   :  { %498 = vset.pattern.permute.xlu1 %v531_v24  ;;  %v186_v29 = vld [vmem:[%s677_s3] sm:$0xff]  ;;  %s408_s26 = sshll.u32 %s532_s25, 4  ;;  %s409_s26 = int_to_ptr.vmem [resolvable:$true] %s408_s26 }
   0x8   :  { %442 = vmatmul.mubr.msk.bf16.vlgmr.msra.gmra.mrb[0].mxu0 %vm40_vm2, %v416_v4  ;;  %v223_v45 = vld [vmem:[%s679_s5] sm:$0xf]  ;;  %p508_p1 = scmp.lt.s32.totalorder %s409_s26, %s409_s26 }
   0x9   :  { %447 = vmatprep.mubr.msk.bf16.mxu0 %vm529_vm1, %v528_v1  ;;  %v373_v59 = vld [vmem:[%s681_s7] sm:$0xff]  ;;  %s503_s7 = scalar_lea.vmem %s409_s26, 128 }
   0xa   :  { %v372_v63 = vld [vmem:[%s680_s6] sm:$0xff]  ;;  %p504_p0 = scmp.ne.s32.totalorder %s409_s26, %s503_s7  ;;  %p509_p2 = scmp.lt.s32.totalorder %s503_s7, %s503_s7 }
   0xc   :  { %p510_p3 = por %p509_p2, %p508_p1 }
   0xe   :  { %p511_p4 = pnand %p510_p3, %p504_p0 }
  0x74   :  { %v34_v5 = vpop.permute.xlu0 %33 }
  0x75   :  { %v36_v6 = vpack.c.bf16 %v34_v5, %v34_v5 }
  0x77   :  { %v92_v7 = vsel %vm44_vm0, %v36_v6, 0 }
  0x78   :  { %446 = vmatpush3.bf16.msra.mxu0 %v92_v7  ;;  %v135_v9 = vpop.permute.xlu0 %134 }
  0x79   :  { %v138_v10 = vpack.c.bf16 %v135_v9, %v135_v9  ;;  %451 = vmatprep.subr.bf16.mxu0 %v528_v1 }
  0x7b   :  { %448 = vmatmul.mubr.msk.bf16.vlgmr.msra.gmra.mrb[0].mxu0 %vm40_vm2, %v35_v8  ;;  %v143_v11 = vsel %vm44_vm0, %v138_v10, 0 }
  0x7c   :  { %452 = vmatpush3.bf16.msra.mxu0 %v143_v11  ;;  %453 = vmatprep.mubr.msk.bf16.mxu0 %vm529_vm1, %v528_v1 }
  0x87   :  { %454 = vmatmul.mubr.msk.bf16.vlgmr.msra.gmra.mrb[0].mxu0 %vm40_vm2, %v419_v12 }
 0x15a   :  { %v179_v14 = vpop.f32.mrb[0].mxu0 }
 0x15b   :  { %v455_v15 = vpop.f32.mrb[1].mxu0  ;;  %v194_v16 = vmul.f32 %v619_v13, %v179_v14 }
 0x15c   :  { %v182_v17 = vpop.f32.mrb[2].mxu0 }
 0x15d   :  { %195 = vadd.xlane.f32.xlu1 %v194_v16  ;;  %v456_v18 = vpop.f32.mrb[3].mxu0 }
 0x1ea   :  { %v196_v19 = vpop.xlane.xlu1 %195 }
 0x1eb   :  { %v197_v20 = vmul.f32 0.03125, %v196_v19 }
 0x1ed   :  { %v198_v21 = vsub.f32 %v179_v14, %v197_v20 }
 0x1ef   :  { %v199_v22 = vmul.f32 %v619_v13, %v198_v21 }
 0x1f1   :  { %v200_v23 = vmul.f32 %v199_v22, %v199_v22 }
 0x1f3   :  { %201 = vadd.xlane.f32.xlu1 %v200_v23 }
 0x204   :  { %215 = vperm.xlu1 %498, %v187_v25  }
 0x280   :  { %v202_v26 = vpop.xlane.xlu1 %201 }
 0x281   :  { %v203_v27 = vmul.f32 0.03125, %v202_v26 }
 0x283   :  { %v204_v28 = vadd.f32 1e-05, %v203_v27 }
 0x284   :  { %v216_v33 = vpop.permute.xlu1 %215 }
 0x285   :  { %499 = vrsqrt.f32 %v204_v28 }
 0x28f   :  { %v500_v30 = vpop.eup %499 }
 0x290   :  { %v206_v31 = vmul.f32 %v500_v30, %v186_v29 }
 0x292   :  { %209 = vperm.xlu0 %497, %v206_v31  }
 0x311   :  { %v210_v32 = vpop.permute.xlu0 %209 }
 0x312   :  { %v212_v34 = vmul.f32 %v210_v32, %v198_v21 }
 0x314   :  { %v218_v35 = vadd.f32 %v216_v33, %v212_v34 }
 0x316   :  { %v219_v36 = vmax.f32 %v218_v35, 0.0 }
 0x318   :  { %v220_v37 = vmul.f32 %v619_v13, %v219_v36 }
 0x31a   :  { %221 = vrot.lane.b32.xlu0 %v220_v37, %s527_s29  ;;  %v227_v38 = vpack.c.bf16 %v220_v37, %v220_v37 }
 0x31c   :  { %v232_v39 = vsel %vm44_vm0, %v227_v38, 0 }
 0x31d   :  { %458 = vmatpush3.bf16.msra.mxu1 %v232_v39 }
 0x31e   :  { %320 = vrot.lane.b32.xlu0 %v220_v37, %s530_s9  ;;  %463 = vmatprep.subr.bf16.mxu1 %v528_v1 }
 0x320   :  { %460 = vmatmul.mubr.msk.bf16.vlgmr.msra.gmra.mrb[0].mxu1 %vm40_vm2, %v422_v40 }
 0x321   :  { %465 = vmatprep.mubr.msk.bf16.mxu1 %vm529_vm1, %v528_v1 }
 0x38c   :  { %v222_v41 = vpop.permute.xlu0 %221 }
 0x38d   :  { %v224_v42 = vpack.c.bf16 %v222_v41, %v222_v41 }
 0x38f   :  { %v278_v43 = vsel %vm44_vm0, %v224_v42, 0 }
 0x390   :  { %v321_v44 = vpop.permute.xlu0 %320  ;;  %464 = vmatpush3.bf16.msra.mxu1 %v278_v43 }
 0x391   :  { %v324_v46 = vpack.c.bf16 %v321_v44, %v321_v44  ;;  %469 = vmatprep.subr.bf16.mxu1 %v528_v1 }
 0x393   :  { %v329_v47 = vsel %vm44_vm0, %v324_v46, 0  ;;  %466 = vmatmul.mubr.msk.bf16.vlgmr.msra.gmra.mrb[0].mxu1 %vm40_vm2, %v223_v45 }
 0x394   :  { %470 = vmatpush3.bf16.msra.mxu1 %v329_v47  ;;  %471 = vmatprep.mubr.msk.bf16.mxu1 %vm529_vm1, %v528_v1 }
 0x39f   :  { %472 = vmatmul.mubr.msk.bf16.vlgmr.msra.gmra.mrb[0].mxu1 %vm40_vm2, %v425_v48 }
 0x472   :  { %v365_v49 = vpop.f32.mrb[0].mxu1 }
 0x473   :  { %v473_v50 = vpop.f32.mrb[1].mxu1  ;;  %v374_v51 = vmul.f32 %v619_v13, %v365_v49 }
 0x474   :  { %v368_v52 = vpop.f32.mrb[2].mxu1 }
 0x475   :  { %375 = vadd.xlane.f32.xlu0 %v374_v51  ;;  %v474_v53 = vpop.f32.mrb[3].mxu1 }
 0x502   :  { %v376_v54 = vpop.xlane.xlu0 %375 }
 0x503   :  { %v377_v55 = vmul.f32 0.03125, %v376_v54 }
 0x505   :  { %v378_v56 = vsub.f32 %v365_v49, %v377_v55 }
 0x507   :  { %v379_v57 = vmul.f32 %v619_v13, %v378_v56 }
 0x509   :  { %v380_v58 = vmul.f32 %v379_v57, %v379_v57 }
 0x50b   :  { %381 = vadd.xlane.f32.xlu1 %v380_v58 }
 0x51c   :  { %395 = vperm.xlu1 %498, %v373_v59  }
 0x598   :  { %v382_v60 = vpop.xlane.xlu1 %381 }
 0x599   :  { %v383_v61 = vmul.f32 0.03125, %v382_v60 }
 0x59b   :  { %v384_v62 = vadd.f32 1e-05, %v383_v61 }
 0x59c   :  { %v396_v5 = vpop.permute.xlu1 %395 }
 0x59d   :  { %501 = vrsqrt.f32 %v384_v62 }
 0x5a7   :  { %v502_v1 = vpop.eup %501 }
 0x5a8   :  { %v386_v2 = vmul.f32 %v502_v1, %v372_v63 }
 0x5aa   :  { %389 = vperm.xlu0 %497, %v386_v2  }
 0x629   :  { %v390_v3 = vpop.permute.xlu0 %389 }
 0x62a   :  { %v392_v4 = vmul.f32 %v390_v3, %v378_v56 }
 0x62c   :  { %v398_v6 = vadd.f32 %v396_v5, %v392_v4 }
 0x62e   :  { %v399_v7 = vadd.f32 %v398_v6, %v581_v0 }
 0x630   :  { %v400_v8 = vmax.f32 %v399_v7, 0.0 }
 0x632   :  { %401 = vst [vmem:[#allocation2] sm:$0xff] %v400_v8 }
 0x633   :  { %514 = shalt.err (!%p511_p4)
}
 0x634   :  { %s515_s28 = scalar_lea.hbm %s682_s8, 128 }
 0x635   :  { %p516_p5 = scmp.ne.s32.totalorder %s682_s8, %s515_s28  ;;  %p519_p6 = scmp.lt.u32.totalorder %s515_s28, %s682_s8 }
 0x637   :  { %p521_p7 = pnand %p519_p6, %p516_p5 }
 0x639   :  { %524 = shalt.err (!%p521_p7)
}
 0x63a   :  { %411 = dma.vmem_to_hbm [thread:$0]  %s409_s26, 128, %s682_s8, [#allocation3]  }
 0x63b   :  { %525 = dma.done.wait [#allocation3], 128  }
 0x63c   :  { %526 = vsyncadd [#allocation3], 4294967168 }
 0x63d   :  { %415 = vsyncpa [#allocation3], 1 }

</bundles_post_ra>
